<compile_context>
chip_gen: v7x
topology: tpu7x:2x2x1
jax: 0.10.0
libtpu: 0.0.40
codegen_flags: <defaults>
</compile_context>

<pallas_src>
import functools

import jax
import jax.numpy as jnp
from jax.experimental import pallas as pl
from jax.experimental.pallas import tpu as pltpu


def _spmm_kernel(rows_ref, cols_ref, vals_ref, x_ref, out_ref, *, m_tile):
    k = pl.program_id(1)

    @pl.when(k == 0)
    def _():
        out_ref[...] = jnp.zeros_like(out_ref)

    nnz_t = rows_ref.shape[1]
    n_pad = x_ref.shape[0]

    # ---- Gather on the MXU: Xg = G @ X, G[kk, n] = 1.0 iff cols[kk] == n ----
    cols_b = cols_ref[...]                                            # (nnz_t, 1) i32
    col_iota = jax.lax.broadcasted_iota(jnp.int32, (nnz_t, n_pad), 1)
    gmat = (cols_b == col_iota).astype(jnp.float32)                   # (nnz_t, N_pad)
    xg = jnp.dot(gmat, x_ref[...], preferred_element_type=jnp.float32)

    # ---- Scatter-add on the MXU: one-hot built transposed + value-weighted ----
    #   S[mm, kk] = vals[kk] iff rows[kk] == m_base + mm
    # rows/vals live in (1, nnz_t) layout so broadcasts run along sublanes (cheap).
    rows_b = rows_ref[...]                                            # (1, nnz_t) i32
    vals_b = vals_ref[...]                                            # (1, nnz_t) f32
    m_base = pl.program_id(0) * m_tile
    row_iota = jax.lax.broadcasted_iota(jnp.int32, (m_tile, nnz_t), 0) + m_base
    smat = jnp.where(rows_b == row_iota, vals_b, 0.0)                 # (m_tile, nnz_t)

    out_ref[...] += jnp.dot(smat, xg, preferred_element_type=jnp.float32)


def _round_up(x, m):
    return (x + m - 1) // m * m


def gcn_layer(rows, cols, vals, embeds, num_rows):
    """out = sparse_COO(rows, cols, vals; shape (num_rows, N)) @ embeds."""
    n, f = embeds.shape
    nnz = rows.shape[0]

    F_PAD = _round_up(f, 128)                      # lane-dense output stores
    N_PAD = _round_up(n, 8)

    # Adaptive nnz tile: fewer grid steps for larger graphs, same total FLOPs.
    NNZ_PAD = _round_up(nnz, 128)
    NNZ_TILE = min(512, NNZ_PAD)
    NNZ_PAD = _round_up(NNZ_PAD, NNZ_TILE)

    # Adaptive m tile: bigger tile => fewer redundant gather passes + writebacks.
    if num_rows <= 512:
        M_TILE = _round_up(num_rows, 8)
        M_PAD = M_TILE
    else:
        M_TILE = 512
        M_PAD = _round_up(num_rows, M_TILE)

    # Zero-pad nnz: padded entries carry vals == 0 so they contribute nothing.
    rows2d = jnp.zeros((1, NNZ_PAD), jnp.int32).at[0, :nnz].set(rows.astype(jnp.int32))
    vals2d = jnp.zeros((1, NNZ_PAD), jnp.float32).at[0, :nnz].set(vals.astype(jnp.float32))
    cols2d = jnp.zeros((NNZ_PAD, 1), jnp.int32).at[:nnz, 0].set(cols.astype(jnp.int32))
    x_pad = jnp.zeros((N_PAD, F_PAD), jnp.float32).at[:n, :f].set(embeds.astype(jnp.float32))

    grid = (M_PAD // M_TILE, NNZ_PAD // NNZ_TILE)
    kernel = functools.partial(_spmm_kernel, m_tile=M_TILE)

    # TODO(synk): for graphs where the (N_PAD, F_PAD) embeds block no longer
    # fits VMEM, replace the resident one-hot gather with scalar-prefetched
    # indices + manual DMA row gather (PrefetchScalarGridSpec / make_async_copy).
    out = pl.pallas_call(
        kernel,
        out_shape=jax.ShapeDtypeStruct((M_PAD, F_PAD), jnp.float32),
        grid_spec=pltpu.PrefetchScalarGridSpec(
            num_scalar_prefetch=0,
            grid=grid,
            in_specs=[
                pl.BlockSpec((1, NNZ_TILE), lambda m, k: (0, k)),    # rows (sublane-1 layout)
                pl.BlockSpec((NNZ_TILE, 1), lambda m, k: (k, 0)),    # cols
                pl.BlockSpec((1, NNZ_TILE), lambda m, k: (0, k)),    # vals (sublane-1 layout)
                pl.BlockSpec((N_PAD, F_PAD), lambda m, k: (0, 0)),   # embeds, VMEM-resident
            ],
            out_specs=pl.BlockSpec((M_TILE, F_PAD), lambda m, k: (m, 0)),
        ),
        compiler_params=pltpu.CompilerParams(
            dimension_semantics=("parallel", "arbitrary"),
            vmem_limit_bytes=32 * 1024 * 1024,
        ),
    )(rows2d, cols2d, vals2d, x_pad)

    return out[:num_rows, :f]


def _reference(rows, cols, vals, embeds, num_rows):
    # Pure-JAX reference for torch.sparse.mm(adj, embeds).
    return jax.ops.segment_sum(vals[:, None] * embeds[cols], rows,
                               num_segments=num_rows)


def _run_case(key, num_nodes, hidden, nnz):
    k_r, k_c, k_v, k_x = jax.random.split(key, 4)
    rows = jax.random.randint(k_r, (nnz,), 0, num_nodes, jnp.int32)
    cols = jax.random.randint(k_c, (nnz,), 0, num_nodes, jnp.int32)
    vals = jax.random.uniform(k_v, (nnz,), jnp.float32, 0.05, 1.0)
    embeds = jax.random.normal(k_x, (num_nodes, hidden), jnp.float32)

    out = gcn_layer(rows, cols, vals, embeds, num_nodes)
    out = jax.block_until_ready(out)

    ref = _reference(rows, cols, vals, embeds, num_nodes)
    assert out.shape == (num_nodes, hidden)
    assert jnp.allclose(out, ref, atol=1e-4, rtol=1e-4), "mismatch vs JAX reference"


if __name__ == "__main__":
    key = jax.random.PRNGKey(0)
    k1, k2 = jax.random.split(key)

    # Small case (matches the module's typical tiny unit-test scale).
    # leaky = 0.5 is a GCNLayer ctor arg; LeakyReLU is unused in forward().
    _run_case(k1, num_nodes=24, hidden=16, nnz=96)

    # Larger case: exercises multiple m tiles AND multiple nnz tiles
    # (accumulation across the 'arbitrary' axis + pl.when init path).
    _run_case(k2, num_nodes=640, hidden=48, nnz=1500)

    print("KERNEL_OK")
</pallas_src>

<mosaic_0001>
module attributes {stable_mosaic.version = 11 : i64} {
  func.func @_spmm_kernel(%arg0: i32, %arg1: i32, %arg2: memref<1x128xi32, #tpu.memory_space<vmem>>, %arg3: memref<128x1xi32, #tpu.memory_space<vmem>>, %arg4: memref<1x128xf32, #tpu.memory_space<vmem>>, %arg5: memref<24x128xf32, #tpu.memory_space<vmem>>, %arg6: memref<24x128xf32, #tpu.memory_space<vmem>>) attributes {dimension_semantics = [#tpu.dimension_semantics<parallel>, #tpu.dimension_semantics<arbitrary>], iteration_bounds = array<i64: 1, 1>, scalar_prefetch = 0 : i64, scratch_operands = 0 : i64, tpu.core_type = #tpu.core_type<tc>, window_params = [{transform_indices = @transform_0, window_bounds = array<i64: 1, 128>}, {transform_indices = @transform_1, window_bounds = array<i64: 128, 1>}, {transform_indices = @transform_2, window_bounds = array<i64: 1, 128>}, {pipeline_mode = #tpu.pipeline_mode<synchronous>, transform_indices = @transform_3, window_bounds = array<i64: 24, 128>}, {transform_indices = @transform_4, window_bounds = array<i64: 24, 128>}]} {
    %c0_i32 = arith.constant 0 : i32
    %0 = arith.cmpi eq, %arg1, %c0_i32 : i32
    %1 = arith.extui %0 : i1 to i32
    %c0_i32_0 = arith.constant 0 : i32
    %2 = arith.cmpi ne, %1, %c0_i32_0 : i32
    scf.if %2 {
      %cst_14 = arith.constant 0.000000e+00 : f32
      %27 = vector.broadcast %cst_14 : f32 to vector<24x128xf32>
      %c0_15 = arith.constant 0 : index
      %c0_16 = arith.constant 0 : index
      %28 = vector.load %arg6[%c0_15, %c0_16] : memref<24x128xf32, #tpu.memory_space<vmem>>, vector<24x128xf32>
      tpu.vector_store %arg6[%c0_15, %c0_16], %27 {strides = array<i32>} : memref<24x128xf32, #tpu.memory_space<vmem>>, vector<24x128xf32>,
    } else {
    }
    %c0 = arith.constant 0 : index
    %c0_1 = arith.constant 0 : index
    %3 = vector.load %arg3[%c0, %c0_1] : memref<128x1xi32, #tpu.memory_space<vmem>>, vector<128x1xi32>
    %4 = tpu.iota {dimensions = array<i32: 1>} : vector<128x24xi32>
    %5 = vector.broadcast %3 : vector<128x1xi32> to vector<128x24xi32>
    %6 = arith.cmpi eq, %5, %4 : vector<128x24xi32>
    %7 = arith.extui %6 : vector<128x24xi1> to vector<128x24xi32>
    %8 = arith.sitofp %7 : vector<128x24xi32> to vector<128x24xf32>
    %c0_2 = arith.constant 0 : index
    %c0_3 = arith.constant 0 : index
    %9 = vector.load %arg5[%c0_2, %c0_3] : memref<24x128xf32, #tpu.memory_space<vmem>>, vector<24x128xf32>
    %cst = arith.constant dense<0.000000e+00> : vector<128x128xf32>
    %10 = tpu.matmul %8, %9, %cst {dimension_numbers = #tpu.dot_dimension_numbers<[1], [0], [0], [1], [0, 0, 1, 1], [], []>} : vector<128x24xf32>, vector<24x128xf32>, vector<128x128xf32> -> vector<128x128xf32>
    %c0_4 = arith.constant 0 : index
    %c0_5 = arith.constant 0 : index
    %11 = vector.load %arg2[%c0_4, %c0_5] : memref<1x128xi32, #tpu.memory_space<vmem>>, vector<1x128xi32>
    %c0_6 = arith.constant 0 : index
    %c0_7 = arith.constant 0 : index
    %12 = vector.load %arg4[%c0_6, %c0_7] : memref<1x128xf32, #tpu.memory_space<vmem>>, vector<1x128xf32>
    %c24_i32 = arith.constant 24 : i32
    %13 = arith.muli %arg0, %c24_i32 : i32
    %14 = tpu.iota {dimensions = array<i32: 0>} : vector<24x128xi32>
    %15 = vector.broadcast %13 : i32 to vector<24x128xi32>
    %16 = arith.addi %14, %15 : vector<24x128xi32>
    %17 = vector.broadcast %11 : vector<1x128xi32> to vector<24x128xi32>
    %18 = arith.cmpi eq, %17, %16 : vector<24x128xi32>
    %cst_8 = arith.constant 0.000000e+00 : f32
    %19 = vector.shape_cast %12 : vector<1x128xf32> to vector<1x128xf32>
    %20 = vector.broadcast %19 : vector<1x128xf32> to vector<24x128xf32>
    %21 = vector.broadcast %cst_8 : f32 to vector<24x128xf32>
    %22 = arith.select %18, %20, %21 : vector<24x128xi1>, vector<24x128xf32>
    %c0_9 = arith.constant 0 : index
    %c0_10 = arith.constant 0 : index
    %23 = vector.load %arg6[%c0_9, %c0_10] : memref<24x128xf32, #tpu.memory_space<vmem>>, vector<24x128xf32>
    %cst_11 = arith.constant dense<0.000000e+00> : vector<24x128xf32>
    %24 = tpu.matmul %22, %10, %cst_11 {dimension_numbers = #tpu.dot_dimension_numbers<[1], [0], [0], [1], [0, 0, 1, 1], [], []>} : vector<24x128xf32>, vector<128x128xf32>, vector<24x128xf32> -> vector<24x128xf32>
    %25 = arith.addf %23, %24 : vector<24x128xf32>
    %c0_12 = arith.constant 0 : index
    %c0_13 = arith.constant 0 : index
    %26 = vector.load %arg6[%c0_12, %c0_13] : memref<24x128xf32, #tpu.memory_space<vmem>>, vector<24x128xf32>
    tpu.vector_store %arg6[%c0_12, %c0_13], %25 {strides = array<i32>} : memref<24x128xf32, #tpu.memory_space<vmem>>, vector<24x128xf32>,
    return
  }
  func.func @transform_0(%arg0: i32, %arg1: i32) -> (i32, i32) {
    %c0_i32 = arith.constant 0 : i32
    %c0_i32_0 = arith.constant 0 : i32
    return %c0_i32, %arg1 : i32, i32
  }
  func.func @transform_1(%arg0: i32, %arg1: i32) -> (i32, i32) {
    %c0_i32 = arith.constant 0 : i32
    %c0_i32_0 = arith.constant 0 : i32
    return %arg1, %c0_i32 : i32, i32
  }
  func.func @transform_2(%arg0: i32, %arg1: i32) -> (i32, i32) {
    %c0_i32 = arith.constant 0 : i32
    %c0_i32_0 = arith.constant 0 : i32
    return %c0_i32, %arg1 : i32, i32
  }
  func.func @transform_3(%arg0: i32, %arg1: i32) -> (i32, i32) {
    %c0_i32 = arith.constant 0 : i32
    %c0_i32_0 = arith.constant 0 : i32
    %c0_i32_1 = arith.constant 0 : i32
    return %c0_i32, %c0_i32_0 : i32, i32
  }
  func.func @transform_4(%arg0: i32, %arg1: i32) -> (i32, i32) {
    %c0_i32 = arith.constant 0 : i32
    %c0_i32_0 = arith.constant 0 : i32
    return %arg0, %c0_i32 : i32, i32
  }
}

</mosaic_0001>

<bundles_post_ra>
// kernel: tpu_custom_call.1
= control target key start
LH: loop header
LB: loop body
LE: loop exit
PB: predicated region body
PF: predicated region fallthrough
CT: control target
= control target key end

     0   :  { %v675_v2 = vmov 0   ;;  %s840_s0 = inlined_call_operand.vmem [shape: s32[1,128], index: 0, kind: input, shape index: {}]   ;;  %s841_s1 = inlined_call_operand.vmem [shape: s32[128,1], index: 1, kind: input, shape index: {}]   ;;  %s842_s2 = inlined_call_operand.vmem [shape: f32[1,128], index: 2, kind: input, shape index: {}]   ;;  %s843_s3 = inlined_call_operand.vmem [shape: f32[24,128], index: 3, kind: input, shape index: {}]   ;;  %s844_s4 = inlined_call_operand.hbm [shape: f32[24,128], index: 4, kind: output, shape index: {}]  }
   0x1   :  { %v27_v0 = vld [vmem:[%s841_s1 + $0x10] sm:$0xff]  ;;  %v25_v1 = vld [vmem:[%s841_s1] sm:$0xff]  ;;  %650 = vset.pattern.permute.xlu1 %v675_v2  ;;  %649 = vset.pattern.permute.xlu0 %v675_v2  ;;  %v28_v3 = vld [vmem:[%s841_s1 + $0x18] sm:$0xff] }
   0x2   :  { %50 = vperm.xlu1 %650, %v27_v0   ;;  %44 = vperm.xlu0 %649, %v25_v1   ;;  %v26_v4 = vld [vmem:[%s841_s1 + $0x8] sm:$0xff]  ;;  %v139_v5 = vld [vmem:[%s843_s3] sm:$0xff] }
   0x3   :  { %v140_v6 = vld [vmem:[%s843_s3 + $0x8] sm:$0xff] }
   0x4   :  { %v614_v7 = vpack.c.bf16 %v140_v6, %v139_v5 }
   0x6   :  { %53 = vperm.xlu1 %650, %v28_v3   ;;  %47 = vperm.xlu0 %649, %v26_v4  }
   0x7   :  { %9 = vsyncpa [#allocation3], 0  ;;  %v30_v8 = vld [vmem:[%s841_s1 + $0x28] sm:$0xff]  ;;  %v29_v9 = vld [vmem:[%s841_s1 + $0x20] sm:$0xff]  ;;  %615 = vmatprep.subr.bf16.mxu0 %v614_v7  ;;  %v41_v21 = vlaneseq  ;;  %vm142_vm0 = vcmask 195584   ;;  %v676_v25 = vmov 0.0  }
   0x8   :  { %v141_v10 = vld [vmem:[%s843_s3 + $0x10] sm:$0xff]  ;;  %617 = vmatpush3.bf16.msra.mxu0 %v614_v7  ;;  %v32_v11 = vld [vmem:[%s841_s1 + $0x38] sm:$0xff]  ;;  %v34_v13 = vld [vmem:[%s841_s1 + $0x48] sm:$0xff]  ;;  %v677_v56 = vmov 0.0|0.0  }
   0x9   :  { %v31_v12 = vld [vmem:[%s841_s1 + $0x30] sm:$0xff]  ;;  %547 = vmatprep.subr.mxu0 %v141_v10  ;;  %v33_v14 = vld [vmem:[%s841_s1 + $0x40] sm:$0xff]  ;;  %v36_v15 = vld [vmem:[%s841_s1 + $0x58] sm:$0xff]  ;;  %v765_v22 = vand.u32 127, %v41_v21  ;;  %618 = vmatprep.subr.bf16.mxu1 %v677_v56 }
   0xa   :  { %59 = vperm.xlu1 %650, %v30_v8   ;;  %56 = vperm.xlu0 %649, %v29_v9   ;;  %v35_v16 = vld [vmem:[%s841_s1 + $0x50] sm:$0xff]  ;;  %v38_v17 = vld [vmem:[%s841_s1 + $0x68] sm:$0xff]  ;;  %v37_v18 = vld [vmem:[%s841_s1 + $0x60] sm:$0xff] }
   0xb   :  { %v40_v19 = vld [vmem:[%s841_s1 + $0x78] sm:$0xff]  ;;  %v39_v20 = vld [vmem:[%s841_s1 + $0x70] sm:$0xff] }
   0xc   :  { %548 = vmatpush3.msra.mxu0 %v141_v10 }
   0xe   :  { %65 = vperm.xlu1 %650, %v32_v11   ;;  %62 = vperm.xlu0 %649, %v31_v12  }
  0x12   :  { %71 = vperm.xlu1 %650, %v34_v13   ;;  %68 = vperm.xlu0 %649, %v33_v14  }
  0x16   :  { %77 = vperm.xlu1 %650, %v36_v15   ;;  %74 = vperm.xlu0 %649, %v35_v16   ;;  %v340_v15 = vshrl.u32 %v41_v21, 7 }
  0x18   :  { %v342_v21 = vadd.s32 16, %v340_v15 }
  0x1a   :  { %83 = vperm.xlu1 %650, %v38_v17   ;;  %80 = vperm.xlu0 %649, %v37_v18   ;;  %v500_v17 = vld [vmem:[%s840_s0] ss:$0 sm:$0xff]  ;;  %s679_s0 = smov [#allocation2]  }
  0x1e   :  { %89 = vperm.xlu1 %650, %v40_v19   ;;  %86 = vperm.xlu0 %649, %v39_v20   ;;  %v501_v19 = vld [vmem:[%s842_s2] ss:$0 sm:$0xff]  ;;  %v341_v20 = vadd.s32 8, %v340_v15  ;;  %s457_s2 = sshll.u32 %s679_s0, 4  ;;  %s458_s2 = int_to_ptr.vmem [resolvable:$true] %s457_s2 }
  0x1f   :  { %s651_s29 = scalar_lea.vmem %s458_s2, 384  ;;  %p656_p1 = scmp.lt.s32.totalorder %s458_s2, %s458_s2 }
  0x20   :  { %p652_p0 = scmp.ne.s32.totalorder %s458_s2, %s651_s29  ;;  %p657_p2 = scmp.lt.s32.totalorder %s651_s29, %s651_s29 }
  0x22   :  { %p658_p3 = por %p657_p2, %p656_p1 }
  0x24   :  { %p659_p4 = pnand %p658_p3, %p652_p0 }
  0x81   :  { %v51_v23 = vpop.permute.xlu1 %50  ;;  %v45_v24 = vpop.permute.xlu0 %44 }
  0x82   :  { %vm91_vm1 = vcmp.eq.s32.totalorder %v45_v24, %v765_v22  ;;  %vm93_vm2 = vcmp.eq.s32.totalorder %v51_v23, %v765_v22 }
  0x83   :  { %v468_v26 = vsel %vm91_vm1, 1.0, %v676_v25  ;;  %v470_v29 = vsel %vm93_vm2, 1.0, %v676_v25  ;;  %vm678_vm2 = vmmov 0  }
  0x84   :  { %549 = vmatprep.mubr.msk.f32.mxu0 %vm142_vm0, %v468_v26  ;;  %605 = vmatprep.mubr.msk.f32.mxu1 %vm678_vm2, %v676_v25 }
  0x85   :  { %v54_v27 = vpop.permute.xlu1 %53  ;;  %v48_v28 = vpop.permute.xlu0 %47 }
  0x86   :  { %vm92_vm3 = vcmp.eq.s32.totalorder %v48_v28, %v765_v22  ;;  %vm94_vm4 = vcmp.eq.s32.totalorder %v54_v27, %v765_v22 }
  0x87   :  { %v469_v30 = vsel %vm92_vm3, 1.0, %v676_v25  ;;  %v471_v33 = vsel %vm94_vm4, 1.0, %v676_v25  ;;  %vm352_vm3 = vcmp.eq.s32.totalorder %v500_v17, %v341_v20  ;;  %vm353_vm4 = vcmp.eq.s32.totalorder %v500_v17, %v342_v21 }
  0x88   :  { %550 = vmatmul.mubr.msk.f32.vlgmr.msra.gmra.mrb[0].mxu0 %vm142_vm0, %v469_v30 }
  0x89   :  { %v60_v31 = vpop.permute.xlu1 %59  ;;  %v57_v32 = vpop.permute.xlu0 %56  ;;  %552 = vmatprep.mubr.msk.f32.mxu0 %vm142_vm0, %v470_v29 }
  0x8a   :  { %vm95_vm5 = vcmp.eq.s32.totalorder %v57_v32, %v765_v22  ;;  %vm96_vm6 = vcmp.eq.s32.totalorder %v60_v31, %v765_v22 }
  0x8b   :  { %v472_v34 = vsel %vm95_vm5, 1.0, %v676_v25  ;;  %v473_v37 = vsel %vm96_vm6, 1.0, %v676_v25 }
  0x8c   :  { %553 = vmatmul.mubr.msk.f32.gmra.mrb[2].mxu0 %vm142_vm0, %v471_v33 }
  0x8d   :  { %v66_v35 = vpop.permute.xlu1 %65  ;;  %v63_v36 = vpop.permute.xlu0 %62  ;;  %555 = vmatprep.mubr.msk.f32.mxu0 %vm142_vm0, %v472_v34 }
  0x8e   :  { %vm97_vm7 = vcmp.eq.s32.totalorder %v63_v36, %v765_v22  ;;  %vm98_vm8 = vcmp.eq.s32.totalorder %v66_v35, %v765_v22 }
  0x8f   :  { %v474_v38 = vsel %vm97_vm7, 1.0, %v676_v25  ;;  %v475_v41 = vsel %vm98_vm8, 1.0, %v676_v25 }
  0x90   :  { %556 = vmatmul.mubr.msk.f32.gmra.mrb[4].mxu0 %vm142_vm0, %v473_v37 }
  0x91   :  { %v72_v39 = vpop.permute.xlu1 %71  ;;  %v69_v40 = vpop.permute.xlu0 %68  ;;  %558 = vmatprep.mubr.msk.f32.mxu0 %vm142_vm0, %v474_v38 }
  0x92   :  { %vm99_vm9 = vcmp.eq.s32.totalorder %v69_v40, %v765_v22  ;;  %vm100_vm10 = vcmp.eq.s32.totalorder %v72_v39, %v765_v22 }
  0x93   :  { %v476_v42 = vsel %vm99_vm9, 1.0, %v676_v25  ;;  %v477_v45 = vsel %vm100_vm10, 1.0, %v676_v25 }
  0x94   :  { %559 = vmatmul.mubr.msk.f32.gmra.mrb[6].mxu0 %vm142_vm0, %v475_v41 }
  0x95   :  { %v78_v43 = vpop.permute.xlu1 %77  ;;  %v75_v44 = vpop.permute.xlu0 %74  ;;  %561 = vmatprep.mubr.msk.f32.mxu0 %vm142_vm0, %v476_v42 }
  0x96   :  { %vm101_vm11 = vcmp.eq.s32.totalorder %v75_v44, %v765_v22  ;;  %vm102_vm12 = vcmp.eq.s32.totalorder %v78_v43, %v765_v22 }
  0x97   :  { %v478_v46 = vsel %vm101_vm11, 1.0, %v676_v25  ;;  %v479_v49 = vsel %vm102_vm12, 1.0, %v676_v25 }
  0x98   :  { %562 = vmatmul.mubr.msk.f32.gmra.mrb[8].mxu0 %vm142_vm0, %v477_v45 }
  0x99   :  { %v84_v47 = vpop.permute.xlu1 %83  ;;  %v81_v48 = vpop.permute.xlu0 %80  ;;  %564 = vmatprep.mubr.msk.f32.mxu0 %vm142_vm0, %v478_v46 }
  0x9a   :  { %vm103_vm13 = vcmp.eq.s32.totalorder %v81_v48, %v765_v22  ;;  %vm104_vm14 = vcmp.eq.s32.totalorder %v84_v47, %v765_v22 }
  0x9b   :  { %v480_v50 = vsel %vm103_vm13, 1.0, %v676_v25  ;;  %v481_v53 = vsel %vm104_vm14, 1.0, %v676_v25 }
  0x9c   :  { %565 = vmatmul.mubr.msk.f32.gmra.mrb[10].mxu0 %vm142_vm0, %v479_v49 }
  0x9d   :  { %v90_v51 = vpop.permute.xlu1 %89  ;;  %v87_v52 = vpop.permute.xlu0 %86  ;;  %567 = vmatprep.mubr.msk.f32.mxu0 %vm142_vm0, %v480_v50 }
  0x9e   :  { %vm105_vm15 = vcmp.eq.s32.totalorder %v87_v52, %v765_v22  ;;  %vm106_vm1 = vcmp.eq.s32.totalorder %v90_v51, %v765_v22 }
  0x9f   :  { %v482_v54 = vsel %vm105_vm15, 1.0, %v676_v25  ;;  %v483_v55 = vsel %vm106_vm1, 1.0, %v676_v25 }
  0xa0   :  { %568 = vmatmul.mubr.msk.f32.gmra.mrb[12].mxu0 %vm142_vm0, %v481_v53 }
  0xa1   :  { %570 = vmatprep.mubr.msk.f32.mxu0 %vm142_vm0, %v482_v54 }
  0xa4   :  { %571 = vmatmul.mubr.msk.f32.gmra.mrb[14].mxu0 %vm142_vm0, %v483_v55  ;;  %vm351_vm0 = vcmp.eq.s32.totalorder %v500_v17, %v340_v15 }
 0x15b   :  { %v551_v57 = vpop.f32.mrb[0].mxu0 }
 0x15c   :  { %v257_v58 = vpop.f32.mrb[1].mxu0 }
 0x15d   :  { %v619_v59 = vpack.c.bf16 %v551_v57, %v257_v58 }
 0x15f   :  { %v554_v60 = vpop.f32.mrb[2].mxu0  ;;  %620 = vmatpush3.bf16.msra.mxu1 %v619_v59 }
 0x160   :  { %v267_v61 = vpop.f32.mrb[3].mxu0  ;;  %621 = vmatprep.subr.bf16.mxu1 %v677_v56 }
 0x161   :  { %v622_v62 = vpack.c.bf16 %v554_v60, %v267_v61 }
 0x163   :  { %v557_v63 = vpop.f32.mrb[4].mxu0  ;;  %623 = vmatpush3.bf16.msra.mxu1 %v622_v62 }
 0x164   :  { %v277_v0 = vpop.f32.mrb[5].mxu0  ;;  %624 = vmatprep.subr.bf16.mxu1 %v677_v56 }
 0x165   :  { %v625_v1 = vpack.c.bf16 %v557_v63, %v277_v0 }
 0x167   :  { %v560_v2 = vpop.f32.mrb[6].mxu0  ;;  %626 = vmatpush3.bf16.msra.mxu1 %v625_v1 }
 0x168   :  { %v287_v3 = vpop.f32.mrb[7].mxu0  ;;  %627 = vmatprep.subr.bf16.mxu1 %v677_v56 }
 0x169   :  { %v628_v4 = vpack.c.bf16 %v560_v2, %v287_v3 }
 0x16b   :  { %v563_v5 = vpop.f32.mrb[8].mxu0  ;;  %629 = vmatpush3.bf16.msra.mxu1 %v628_v4 }
 0x16c   :  { %v297_v6 = vpop.f32.mrb[9].mxu0  ;;  %630 = vmatprep.subr.bf16.mxu1 %v677_v56 }
 0x16d   :  { %v631_v7 = vpack.c.bf16 %v563_v5, %v297_v6 }
 0x16f   :  { %v566_v8 = vpop.f32.mrb[10].mxu0  ;;  %632 = vmatpush3.bf16.msra.mxu1 %v631_v7 }
 0x170   :  { %v307_v9 = vpop.f32.mrb[11].mxu0  ;;  %633 = vmatprep.subr.bf16.mxu1 %v677_v56 }
 0x171   :  { %v634_v10 = vpack.c.bf16 %v566_v8, %v307_v9 }
 0x173   :  { %v569_v11 = vpop.f32.mrb[12].mxu0  ;;  %635 = vmatpush3.bf16.msra.mxu1 %v634_v10 }
 0x174   :  { %v317_v12 = vpop.f32.mrb[13].mxu0  ;;  %636 = vmatprep.subr.bf16.mxu1 %v677_v56 }
 0x175   :  { %v637_v13 = vpack.c.bf16 %v569_v11, %v317_v12 }
 0x177   :  { %v572_v14 = vpop.f32.mrb[14].mxu0  ;;  %638 = vmatpush3.bf16.msra.mxu1 %v637_v13 }
 0x178   :  { %v327_v16 = vpop.f32.mrb[15].mxu0  ;;  %639 = vmatprep.subr.bf16.mxu1 %v677_v56 }
 0x179   :  { %v640_v18 = vpack.c.bf16 %v572_v14, %v327_v16 }
 0x17b   :  { %641 = vmatpush3.bf16.msra.mxu1 %v640_v18 }
 0x17e   :  { %606 = vmatmul.mubr.msk.f32.vlgmr.msra.gmra.mrb[0].mxu1 %vm351_vm0, %v501_v19 }
 0x17f   :  { %608 = vmatprep.mubr.msk.f32.mxu1 %vm678_vm2, %v676_v25 }
 0x182   :  { %609 = vmatmul.mubr.msk.f32.gmra.mrb[2].mxu1 %vm352_vm3, %v501_v19 }
 0x183   :  { %611 = vmatprep.mubr.msk.f32.mxu1 %vm678_vm2, %v676_v25 }
 0x186   :  { %612 = vmatmul.mubr.msk.f32.gmra.mrb[4].mxu1 %vm353_vm4, %v501_v19 }
 0x251   :  { %v432_v22 = vpop.f32.mrb[0].mxu1 }
 0x252   :  { %v607_v23 = vpop.f32.mrb[1].mxu1  ;;  %449 = vst [vmem:[#allocation2] sm:$0xff] %v432_v22 }
 0x255   :  { %v437_v24 = vpop.f32.mrb[2].mxu1 }
 0x256   :  { %v610_v26 = vpop.f32.mrb[3].mxu1  ;;  %450 = vst [vmem:[#allocation2 + $0x8] sm:$0xff] %v437_v24 }
 0x259   :  { %v442_v27 = vpop.f32.mrb[4].mxu1 }
 0x25a   :  { %v613_v28 = vpop.f32.mrb[5].mxu1  ;;  %451 = vst [vmem:[#allocation2 + $0x10] sm:$0xff] %v442_v27 }
 0x25b   :  { %662 = shalt.err (!%p659_p4)
}
 0x25c   :  { %s663_s6 = scalar_lea.hbm %s844_s4, 384 }
 0x25d   :  { %p664_p5 = scmp.ne.s32.totalorder %s844_s4, %s663_s6  ;;  %p667_p6 = scmp.lt.u32.totalorder %s663_s6, %s844_s4 }
 0x25f   :  { %p669_p7 = pnand %p667_p6, %p664_p5 }
 0x261   :  { %672 = shalt.err (!%p669_p7)
}
 0x262   :  { %s680_s11 = smov 128   ;;  %s681_s12 = smov 8  }
 0x263   :  { %463 = dma.vmem_to_hbm [thread:$0]  %s458_s2, 384, %s844_s4, [#allocation3], %s680_s11, %s680_s11, %s681_s12  }
 0x264   :  { %673 = dma.done.wait [#allocation3], 384  }
 0x265   :  { %674 = vsyncadd [#allocation3], 4294966912 }
 0x266   :  { %467 = vsyncpa [#allocation3], 1 }

</bundles_post_ra>
